<compile_context>
chip_gen: v5e
topology: v5e:2x2
jax: 0.10.0
libtpu: 0.0.40
codegen_flags: <defaults>
</compile_context>

<pallas_src>
import jax
import jax.numpy as jnp
from jax.experimental import pallas as pl
from jax.experimental.pallas import tpu as pltpu


def _round_up(n, m):
    return ((n + m - 1) // m) * m


def _default_tuning():
    """(tb_cap, vmem_limit_bytes) chosen per TPU generation."""
    try:
        kind = jax.devices()[0].device_kind.lower()
    except Exception:  # pragma: no cover - defensive
        kind = ""
    if "v5" in kind or "v6" in kind:
        # 128 MiB physical VMEM, lowest HBM BW -> big tiles, generous budget.
        return 2048, 64 * 1024 * 1024
    # v7x (64 MiB VMEM, 2 TCs) and unknown chips: conservative budget.
    return 1024, 32 * 1024 * 1024


# -----------------------------------------------------------------------------
# Kernel
# -----------------------------------------------------------------------------
def attention_mlp_kernel(*refs):
    # refs = (x, wa1, ba1, wa2, ba2, w0, b0, w1, b1, ..., w_out, b_out, o)
    x_ref = refs[0]
    wa1_ref, ba1_ref, wa2_ref, ba2_ref = refs[1:5]
    mlp_refs = refs[5:-1]
    o_ref = refs[-1]

    x_f32 = x_ref[...]                        # (TB, D) f32 streamed from HBM
    x_bf = x_f32.astype(jnp.bfloat16)         # MXU input cast happens in-kernel

    # ---- Attention: Linear -> ReLU -> Linear -> Softmax over features ----
    h = jnp.dot(x_bf, wa1_ref[...], preferred_element_type=jnp.float32) + ba1_ref[...]
    h = jnp.maximum(h, 0.0)
    logits = (jnp.dot(h.astype(jnp.bfloat16), wa2_ref[...],
                      preferred_element_type=jnp.float32) + ba2_ref[...])
    # nn.Softmax() on a 2-D tensor -> softmax over dim=1 (the real input_dim
    # columns; no padded columns exist anymore).
    m = jnp.max(logits, axis=-1, keepdims=True)
    e = jnp.exp(logits - m)
    probs = e * pl.reciprocal(jnp.sum(e, axis=-1, keepdims=True), approx=True)
    h = probs * x_f32                         # th.multiply(probs, observations)

    # ---- MLP: (Linear -> ReLU) per hidden layer, final Linear (no act) ----
    n_layers = len(mlp_refs) // 2
    for i in range(n_layers):
        w = mlp_refs[2 * i][...]
        b = mlp_refs[2 * i + 1][...]
        h = jnp.dot(h.astype(jnp.bfloat16), w,
                    preferred_element_type=jnp.float32) + b
        if i < n_layers - 1:
            h = jnp.maximum(h, 0.0)

    o_ref[...] = h.astype(o_ref.dtype)


# -----------------------------------------------------------------------------
# Parameter preparation (done once): cast matmul weights to bf16, biases f32.
# No padding -- arrays keep their natural (fan_in, fan_out) shapes.
# -----------------------------------------------------------------------------
def prepare_params(params):
    (wa1, ba1, wa2, ba2), mlp = params
    att = (wa1.astype(jnp.bfloat16), ba1.astype(jnp.float32),
           wa2.astype(jnp.bfloat16), ba2.astype(jnp.float32))
    mlp_p = [(w.astype(jnp.bfloat16), b.astype(jnp.float32)) for (w, b) in mlp]
    return att, mlp_p


# -----------------------------------------------------------------------------
# Forward wrapper
# -----------------------------------------------------------------------------
def attention_mlp_forward(x, prepared_params, output_dim, *,
                          tb_cap=None, vmem_limit_bytes=None):
    (wa1, ba1, wa2, ba2), mlp = prepared_params
    batch, input_dim = x.shape
    att_hidden = wa1.shape[1]
    out_dim = mlp[-1][0].shape[1]
    assert out_dim == output_dim

    cap_default, vmem_default = _default_tuning()
    tb_cap = cap_default if tb_cap is None else tb_cap
    vmem_limit_bytes = vmem_default if vmem_limit_bytes is None else vmem_limit_bytes

    # Batch tiling with minimal padding: pick the number of steps first, then
    # the smallest multiple-of-8 tile that covers the batch in that many steps.
    n_steps = max(1, pl.cdiv(batch, tb_cap))
    tb = _round_up(max(1, pl.cdiv(batch, n_steps)), 8)
    pb = n_steps * tb

    x_in = x.astype(jnp.float32)
    if pb != batch:
        # Row-only padding (<= ~8*n_steps rows); features stay at input_dim.
        x_in = jnp.pad(x_in, ((0, pb - batch), (0, 0)))

    flat = [x_in, wa1, ba1, wa2, ba2]
    for w, b in mlp:
        flat += [w, b]

    def resident_spec(a):
        # Full-shape block, same block index every grid step -> DMA'd once,
        # stays resident in VMEM across all batch tiles.
        return pl.BlockSpec(a.shape, lambda i: (0,) * a.ndim)

    in_specs = ([pl.BlockSpec((tb, input_dim), lambda i: (i, 0))]
                + [resident_spec(a) for a in flat[1:]])
    out_specs = pl.BlockSpec((tb, out_dim), lambda i: (i, 0))

    # Advisory cost estimate for the XLA scheduler.
    flops = 2 * pb * (input_dim * att_hidden + att_hidden * input_dim
                      + sum(int(w.shape[0]) * int(w.shape[1]) for w, _ in mlp))
    bytes_accessed = (pb * input_dim * 4
                      + sum(int(a.size) * a.dtype.itemsize for a in flat[1:])
                      + pb * out_dim * 4)
    cost = pl.CostEstimate(flops=int(flops),
                           transcendentals=int(pb * input_dim),
                           bytes_accessed=int(bytes_accessed))

    out = pl.pallas_call(
        attention_mlp_kernel,
        grid=(n_steps,),
        out_shape=jax.ShapeDtypeStruct((pb, out_dim), jnp.float32),
        in_specs=in_specs,
        out_specs=out_specs,
        compiler_params=pltpu.CompilerParams(
            dimension_semantics=("parallel",),   # batch tiles split over TCs (v7x)
            vmem_limit_bytes=vmem_limit_bytes,
        ),
        cost_estimate=cost,
    )(*flat)

    if pb != batch:
        out = out[:batch]
    return out


# -----------------------------------------------------------------------------
# Init + pure-JAX reference
# -----------------------------------------------------------------------------
def init_params(key, input_dim, output_dim, net_arch):
    """Deterministic PyTorch-Linear-style (uniform +/- 1/sqrt(fan_in)) init."""
    def linear(k, fan_in, fan_out):
        kw, kb = jax.random.split(k)
        lim = 1.0 / jnp.sqrt(jnp.float32(fan_in))
        w = jax.random.uniform(kw, (fan_in, fan_out), jnp.float32, -lim, lim)
        b = jax.random.uniform(kb, (1, fan_out), jnp.float32, -lim, lim)
        return w, b

    dims = [input_dim] + list(net_arch) + [output_dim]
    keys = jax.random.split(key, 2 + len(dims) - 1)
    wa1, ba1 = linear(keys[0], input_dim, 64)   # attention Linear(input_dim, 64)
    wa2, ba2 = linear(keys[1], 64, input_dim)   # attention Linear(64, input_dim)
    mlp = [linear(keys[2 + i], dims[i], dims[i + 1]) for i in range(len(dims) - 1)]
    return (wa1, ba1, wa2, ba2), mlp


def reference_forward(x, params):
    """Pure-JAX f32 reference mirroring the PyTorch forward."""
    (wa1, ba1, wa2, ba2), mlp = params
    h = jnp.maximum(x @ wa1 + ba1, 0.0)
    probs = jax.nn.softmax(h @ wa2 + ba2, axis=-1)   # nn.Softmax() -> dim=1 on 2-D
    h = probs * x
    for i, (w, b) in enumerate(mlp):
        h = h @ w + b
        if i < len(mlp) - 1:
            h = jnp.maximum(h, 0.0)
    return h


if __name__ == "__main__":
    batch = 8
    input_dim = 32
    output_dim = 16
    net_arch = [64, 64]

    key = jax.random.PRNGKey(0)
    k_x, k_p = jax.random.split(key)
    x = jax.random.normal(k_x, (batch, input_dim), dtype=jnp.float32)
    params = init_params(k_p, input_dim, output_dim, net_arch)
    prepared = prepare_params(params)

    out = attention_mlp_forward(x, prepared, output_dim)
    out = jax.block_until_ready(out)

    ref = reference_forward(x, params)
    assert out.shape == (batch, output_dim)
    assert not jnp.any(jnp.isnan(out)), "NaNs in Pallas kernel output"
    # bf16 MXU matmuls + approx reciprocal -> compare vs f32 reference with a
    # correspondingly looser tolerance.
    assert jnp.allclose(out, ref, atol=2e-2, rtol=2e-2), \
        "Pallas kernel mismatch vs reference"

    print("KERNEL_OK")
</pallas_src>

<mosaic_0001>
module attributes {stable_mosaic.version = 11 : i64} {
  func.func @attention_mlp_kernel(%arg0: i32, %arg1: memref<8x32xf32, #tpu.memory_space<vmem>>, %arg2: memref<32x64xbf16, #tpu.memory_space<vmem>>, %arg3: memref<1x64xf32, #tpu.memory_space<vmem>>, %arg4: memref<64x32xbf16, #tpu.memory_space<vmem>>, %arg5: memref<1x32xf32, #tpu.memory_space<vmem>>, %arg6: memref<32x64xbf16, #tpu.memory_space<vmem>>, %arg7: memref<1x64xf32, #tpu.memory_space<vmem>>, %arg8: memref<64x64xbf16, #tpu.memory_space<vmem>>, %arg9: memref<1x64xf32, #tpu.memory_space<vmem>>, %arg10: memref<64x16xbf16, #tpu.memory_space<vmem>>, %arg11: memref<1x16xf32, #tpu.memory_space<vmem>>, %arg12: memref<8x16xf32, #tpu.memory_space<vmem>>) attributes {dimension_semantics = [#tpu.dimension_semantics<parallel>], iteration_bounds = array<i64: 1>, scalar_prefetch = 0 : i64, scratch_operands = 0 : i64, tpu.core_type = #tpu.core_type<tc>, window_params = [{transform_indices = @transform_0, window_bounds = array<i64: 8, 32>}, {pipeline_mode = #tpu.pipeline_mode<synchronous>, transform_indices = @transform_1, window_bounds = array<i64: 32, 64>}, {pipeline_mode = #tpu.pipeline_mode<synchronous>, transform_indices = @transform_2, window_bounds = array<i64: 1, 64>}, {pipeline_mode = #tpu.pipeline_mode<synchronous>, transform_indices = @transform_3, window_bounds = array<i64: 64, 32>}, {pipeline_mode = #tpu.pipeline_mode<synchronous>, transform_indices = @transform_4, window_bounds = array<i64: 1, 32>}, {pipeline_mode = #tpu.pipeline_mode<synchronous>, transform_indices = @transform_5, window_bounds = array<i64: 32, 64>}, {pipeline_mode = #tpu.pipeline_mode<synchronous>, transform_indices = @transform_6, window_bounds = array<i64: 1, 64>}, {pipeline_mode = #tpu.pipeline_mode<synchronous>, transform_indices = @transform_7, window_bounds = array<i64: 64, 64>}, {pipeline_mode = #tpu.pipeline_mode<synchronous>, transform_indices = @transform_8, window_bounds = array<i64: 1, 64>}, {pipeline_mode = #tpu.pipeline_mode<synchronous>, transform_indices = @transform_9, window_bounds = array<i64: 64, 16>}, {pipeline_mode = #tpu.pipeline_mode<synchronous>, transform_indices = @transform_10, window_bounds = array<i64: 1, 16>}, {transform_indices = @transform_11, window_bounds = array<i64: 8, 16>}]} {
    %c0 = arith.constant 0 : index
    %c0_0 = arith.constant 0 : index
    %0 = vector.load %arg1[%c0, %c0_0] : memref<8x32xf32, #tpu.memory_space<vmem>>, vector<8x32xf32>
    %1 = arith.truncf %0 : vector<8x32xf32> to vector<8x32xbf16>
    %c0_1 = arith.constant 0 : index
    %c0_2 = arith.constant 0 : index
    %2 = vector.load %arg2[%c0_1, %c0_2] : memref<32x64xbf16, #tpu.memory_space<vmem>>, vector<32x64xbf16>
    %cst = arith.constant dense<0.000000e+00> : vector<8x64xf32>
    %3 = tpu.matmul %1, %2, %cst {dimension_numbers = #tpu.dot_dimension_numbers<[1], [0], [0], [1], [0, 0, 1, 1], [], []>} : vector<8x32xbf16>, vector<32x64xbf16>, vector<8x64xf32> -> vector<8x64xf32>
    %c0_3 = arith.constant 0 : index
    %c0_4 = arith.constant 0 : index
    %4 = vector.load %arg3[%c0_3, %c0_4] : memref<1x64xf32, #tpu.memory_space<vmem>>, vector<1x64xf32>
    %5 = vector.broadcast %4 : vector<1x64xf32> to vector<8x64xf32>
    %6 = arith.addf %3, %5 : vector<8x64xf32>
    %cst_5 = arith.constant 0.000000e+00 : f32
    %7 = vector.broadcast %cst_5 : f32 to vector<8x64xf32>
    %8 = arith.maximumf %6, %7 : vector<8x64xf32>
    %9 = arith.truncf %8 : vector<8x64xf32> to vector<8x64xbf16>
    %c0_6 = arith.constant 0 : index
    %c0_7 = arith.constant 0 : index
    %10 = vector.load %arg4[%c0_6, %c0_7] : memref<64x32xbf16, #tpu.memory_space<vmem>>, vector<64x32xbf16>
    %cst_8 = arith.constant dense<0.000000e+00> : vector<8x32xf32>
    %11 = tpu.matmul %9, %10, %cst_8 {dimension_numbers = #tpu.dot_dimension_numbers<[1], [0], [0], [1], [0, 0, 1, 1], [], []>} : vector<8x64xbf16>, vector<64x32xbf16>, vector<8x32xf32> -> vector<8x32xf32>
    %c0_9 = arith.constant 0 : index
    %c0_10 = arith.constant 0 : index
    %12 = vector.load %arg5[%c0_9, %c0_10] : memref<1x32xf32, #tpu.memory_space<vmem>>, vector<1x32xf32>
    %13 = vector.broadcast %12 : vector<1x32xf32> to vector<8x32xf32>
    %14 = arith.addf %11, %13 : vector<8x32xf32>
    %cst_11 = arith.constant dense<0xFF800000> : vector<8xf32>
    %15 = vector.multi_reduction <maximumf>, %14, %cst_11 [1] : vector<8x32xf32> to vector<8xf32>
    %16 = vector.shape_cast %15 : vector<8xf32> to vector<8x1xf32>
    %17 = vector.broadcast %16 : vector<8x1xf32> to vector<8x32xf32>
    %18 = arith.subf %14, %17 : vector<8x32xf32>
    %19 = math.exp %18 : vector<8x32xf32>
    %cst_12 = arith.constant dense<0.000000e+00> : vector<8xf32>
    %20 = vector.multi_reduction <add>, %19, %cst_12 [1] : vector<8x32xf32> to vector<8xf32>
    %21 = vector.shape_cast %20 : vector<8xf32> to vector<8x1xf32>
    %22 = tpu.reciprocal %21 {approx = true} : vector<8x1xf32> -> vector<8x1xf32>
    %23 = vector.broadcast %22 : vector<8x1xf32> to vector<8x32xf32>
    %24 = arith.mulf %19, %23 : vector<8x32xf32>
    %25 = arith.mulf %24, %0 : vector<8x32xf32>
    %c0_13 = arith.constant 0 : index
    %c0_14 = arith.constant 0 : index
    %26 = vector.load %arg6[%c0_13, %c0_14] : memref<32x64xbf16, #tpu.memory_space<vmem>>, vector<32x64xbf16>
    %c0_15 = arith.constant 0 : index
    %c0_16 = arith.constant 0 : index
    %27 = vector.load %arg7[%c0_15, %c0_16] : memref<1x64xf32, #tpu.memory_space<vmem>>, vector<1x64xf32>
    %28 = arith.truncf %25 : vector<8x32xf32> to vector<8x32xbf16>
    %cst_17 = arith.constant dense<0.000000e+00> : vector<8x64xf32>
    %29 = tpu.matmul %28, %26, %cst_17 {dimension_numbers = #tpu.dot_dimension_numbers<[1], [0], [0], [1], [0, 0, 1, 1], [], []>} : vector<8x32xbf16>, vector<32x64xbf16>, vector<8x64xf32> -> vector<8x64xf32>
    %30 = vector.broadcast %27 : vector<1x64xf32> to vector<8x64xf32>
    %31 = arith.addf %29, %30 : vector<8x64xf32>
    %cst_18 = arith.constant 0.000000e+00 : f32
    %32 = vector.broadcast %cst_18 : f32 to vector<8x64xf32>
    %33 = arith.maximumf %31, %32 : vector<8x64xf32>
    %c0_19 = arith.constant 0 : index
    %c0_20 = arith.constant 0 : index
    %34 = vector.load %arg8[%c0_19, %c0_20] : memref<64x64xbf16, #tpu.memory_space<vmem>>, vector<64x64xbf16>
    %c0_21 = arith.constant 0 : index
    %c0_22 = arith.constant 0 : index
    %35 = vector.load %arg9[%c0_21, %c0_22] : memref<1x64xf32, #tpu.memory_space<vmem>>, vector<1x64xf32>
    %36 = arith.truncf %33 : vector<8x64xf32> to vector<8x64xbf16>
    %cst_23 = arith.constant dense<0.000000e+00> : vector<8x64xf32>
    %37 = tpu.matmul %36, %34, %cst_23 {dimension_numbers = #tpu.dot_dimension_numbers<[1], [0], [0], [1], [0, 0, 1, 1], [], []>} : vector<8x64xbf16>, vector<64x64xbf16>, vector<8x64xf32> -> vector<8x64xf32>
    %38 = vector.broadcast %35 : vector<1x64xf32> to vector<8x64xf32>
    %39 = arith.addf %37, %38 : vector<8x64xf32>
    %cst_24 = arith.constant 0.000000e+00 : f32
    %40 = vector.broadcast %cst_24 : f32 to vector<8x64xf32>
    %41 = arith.maximumf %39, %40 : vector<8x64xf32>
    %c0_25 = arith.constant 0 : index
    %c0_26 = arith.constant 0 : index
    %42 = vector.load %arg10[%c0_25, %c0_26] : memref<64x16xbf16, #tpu.memory_space<vmem>>, vector<64x16xbf16>
    %c0_27 = arith.constant 0 : index
    %c0_28 = arith.constant 0 : index
    %43 = vector.load %arg11[%c0_27, %c0_28] : memref<1x16xf32, #tpu.memory_space<vmem>>, vector<1x16xf32>
    %44 = arith.truncf %41 : vector<8x64xf32> to vector<8x64xbf16>
    %cst_29 = arith.constant dense<0.000000e+00> : vector<8x16xf32>
    %45 = tpu.matmul %44, %42, %cst_29 {dimension_numbers = #tpu.dot_dimension_numbers<[1], [0], [0], [1], [0, 0, 1, 1], [], []>} : vector<8x64xbf16>, vector<64x16xbf16>, vector<8x16xf32> -> vector<8x16xf32>
    %46 = vector.broadcast %43 : vector<1x16xf32> to vector<8x16xf32>
    %47 = arith.addf %45, %46 : vector<8x16xf32>
    %c0_30 = arith.constant 0 : index
    %c0_31 = arith.constant 0 : index
    %48 = vector.load %arg12[%c0_30, %c0_31] : memref<8x16xf32, #tpu.memory_space<vmem>>, vector<8x16xf32>
    tpu.vector_store %arg12[%c0_30, %c0_31], %47 {strides = array<i32>} : memref<8x16xf32, #tpu.memory_space<vmem>>, vector<8x16xf32>,
    return
  }
  func.func @transform_0(%arg0: i32) -> (i32, i32) {
    %c0_i32 = arith.constant 0 : i32
    %c0_i32_0 = arith.constant 0 : i32
    return %arg0, %c0_i32 : i32, i32
  }
  func.func @transform_1(%arg0: i32) -> (i32, i32) {
    %c0_i32 = arith.constant 0 : i32
    %c0_i32_0 = arith.constant 0 : i32
    %c0_i32_1 = arith.constant 0 : i32
    return %c0_i32, %c0_i32_0 : i32, i32
  }
  func.func @transform_2(%arg0: i32) -> (i32, i32) {
    %c0_i32 = arith.constant 0 : i32
    %c0_i32_0 = arith.constant 0 : i32
    %c0_i32_1 = arith.constant 0 : i32
    return %c0_i32, %c0_i32_0 : i32, i32
  }
  func.func @transform_3(%arg0: i32) -> (i32, i32) {
    %c0_i32 = arith.constant 0 : i32
    %c0_i32_0 = arith.constant 0 : i32
    %c0_i32_1 = arith.constant 0 : i32
    return %c0_i32, %c0_i32_0 : i32, i32
  }
  func.func @transform_4(%arg0: i32) -> (i32, i32) {
    %c0_i32 = arith.constant 0 : i32
    %c0_i32_0 = arith.constant 0 : i32
    %c0_i32_1 = arith.constant 0 : i32
    return %c0_i32, %c0_i32_0 : i32, i32
  }
  func.func @transform_5(%arg0: i32) -> (i32, i32) {
    %c0_i32 = arith.constant 0 : i32
    %c0_i32_0 = arith.constant 0 : i32
    %c0_i32_1 = arith.constant 0 : i32
    return %c0_i32, %c0_i32_0 : i32, i32
  }
  func.func @transform_6(%arg0: i32) -> (i32, i32) {
    %c0_i32 = arith.constant 0 : i32
    %c0_i32_0 = arith.constant 0 : i32
    %c0_i32_1 = arith.constant 0 : i32
    return %c0_i32, %c0_i32_0 : i32, i32
  }
  func.func @transform_7(%arg0: i32) -> (i32, i32) {
    %c0_i32 = arith.constant 0 : i32
    %c0_i32_0 = arith.constant 0 : i32
    %c0_i32_1 = arith.constant 0 : i32
    return %c0_i32, %c0_i32_0 : i32, i32
  }
  func.func @transform_8(%arg0: i32) -> (i32, i32) {
    %c0_i32 = arith.constant 0 : i32
    %c0_i32_0 = arith.constant 0 : i32
    %c0_i32_1 = arith.constant 0 : i32
    return %c0_i32, %c0_i32_0 : i32, i32
  }
  func.func @transform_9(%arg0: i32) -> (i32, i32) {
    %c0_i32 = arith.constant 0 : i32
    %c0_i32_0 = arith.constant 0 : i32
    %c0_i32_1 = arith.constant 0 : i32
    return %c0_i32, %c0_i32_0 : i32, i32
  }
  func.func @transform_10(%arg0: i32) -> (i32, i32) {
    %c0_i32 = arith.constant 0 : i32
    %c0_i32_0 = arith.constant 0 : i32
    %c0_i32_1 = arith.constant 0 : i32
    return %c0_i32, %c0_i32_0 : i32, i32
  }
  func.func @transform_11(%arg0: i32) -> (i32, i32) {
    %c0_i32 = arith.constant 0 : i32
    %c0_i32_0 = arith.constant 0 : i32
    return %arg0, %c0_i32 : i32, i32
  }
}

</mosaic_0001>

<bundles_post_ra>
// kernel: tpu_custom_call.1
= control target key start
LH: loop header
LB: loop body
LE: loop exit
PB: predicated region body
PF: predicated region fallthrough
CT: control target
= control target key end

     0   :  { %s567_s0 = inlined_call_operand.vmem [shape: f32[8,32], index: 0, kind: input, shape index: {}]   ;;  %s568_s1 = inlined_call_operand.vmem [shape: bf16[32,64], index: 1, kind: input, shape index: {}]   ;;  %s569_s2 = inlined_call_operand.vmem [shape: f32[1,64], index: 2, kind: input, shape index: {}]   ;;  %s570_s3 = inlined_call_operand.vmem [shape: bf16[64,32], index: 3, kind: input, shape index: {}]   ;;  %s571_s4 = inlined_call_operand.vmem [shape: f32[1,32], index: 4, kind: input, shape index: {}]   ;;  %s572_s5 = inlined_call_operand.vmem [shape: bf16[32,64], index: 5, kind: input, shape index: {}]   ;;  %s573_s6 = inlined_call_operand.vmem [shape: f32[1,64], index: 6, kind: input, shape index: {}]   ;;  %s574_s7 = inlined_call_operand.vmem [shape: bf16[64,64], index: 7, kind: input, shape index: {}]   ;;  %s575_s8 = inlined_call_operand.vmem [shape: f32[1,64], index: 8, kind: input, shape index: {}]   ;;  %s576_s9 = inlined_call_operand.vmem [shape: bf16[64,16], index: 9, kind: input, shape index: {}]   ;;  %s577_s10 = inlined_call_operand.vmem [shape: f32[1,16], index: 10, kind: input, shape index: {}]   ;;  %s578_s11 = inlined_call_operand.hbm [shape: f32[8,16], index: 11, kind: output, shape index: {}]  }
   0x1   :  { %v379_v0 = vld [vmem:[%s568_s1 + $0x8] sm:$0xff]  ;;  %v378_v1 = vld [vmem:[%s568_s1] sm:$0xff]  ;;  %v383_v3 = vld [vmem:[%s570_s3 + $0x18] sm:$0xff] }
   0x2   :  { %v40_v2 = vld [vmem:[%s567_s0] sm:$0xff]  ;;  %72 = vmatpush.bf16.msra.mxu0 %v379_v0  ;;  %v382_v4 = vld [vmem:[%s570_s3 + $0x10] sm:$0xff]  ;;  %125 = vmatpush.bf16.msra.mxu1 %v383_v3 }
   0x3   :  { %16 = vsyncpa [#allocation3], 0  ;;  %v41_v5 = vpack.c.bf16 %v40_v2, %v40_v2  ;;  %vm62_vm0 = vcmask 261120   ;;  %v381_v6 = vld [vmem:[%s570_s3 + $0x8] sm:$0xff]  ;;  %v380_v7 = vld [vmem:[%s570_s3] sm:$0xff]  ;;  %vm117_vm1 = vcmask 523264  }
   0x4   :  { %v395_v8 = vld [vmem:[%s569_s2] ss:$0 sm:$0xff]  ;;  %v385_v24 = vld [vmem:[%s572_s5 + $0x8] sm:$0xff]  ;;  %v389_v26 = vld [vmem:[%s574_s7 + $0x18] sm:$0xff]  ;;  %s430_s13 = smov [#allocation2]   ;;  %vm291_vm2 = vcmask 130048  }
   0x5   :  { %v396_v14 = vld [vmem:[%s571_s4] ss:$0 sm:$0xff]  ;;  %176 = vmatpush.bf16.msra.mxu2 %v385_v24  ;;  %228 = vmatpush.bf16.msra.mxu3 %v389_v26  ;;  %v388_v27 = vld [vmem:[%s574_s7 + $0x10] sm:$0xff]  ;;  %v387_v33 = vld [vmem:[%s574_s7 + $0x8] sm:$0xff]  ;;  %s298_s2 = sshll.u32 %s430_s13, 4  ;;  %s300_s4 = sshll.u32 %s578_s11, 4  ;;  %s299_s2 = int_to_ptr.vmem [resolvable:$true] %s298_s2  ;;  %s301_s4 = int_to_ptr.hbm [resolvable:$true] %s300_s4 }
   0x6   :  { %73 = vmatpush.bf16.msra.mxu0 %v378_v1  ;;  %126 = vmatpush.bf16.msra.mxu1 %v382_v4  ;;  %v384_v25 = vld [vmem:[%s572_s5] sm:$0xff]  ;;  %v393_v35 = vld [vmem:[%s576_s9 + $0x18] sm:$0xff]  ;;  %v392_v36 = vld [vmem:[%s576_s9 + $0x10] sm:$0xff] }
   0x7   :  { %v386_v34 = vld [vmem:[%s574_s7] sm:$0xff]  ;;  %v391_v37 = vld [vmem:[%s576_s9 + $0x8] sm:$0xff] }
   0x8   :  { %v397_v38 = vld [vmem:[%s573_s6] ss:$0 sm:$0xff] }
   0x9   :  { %317 = vmatmul.msk.bf16.vlgmr.msra.gmra.mxu0 %vm62_vm0, %v41_v5  ;;  %177 = vmatpush.bf16.msra.mxu2 %v384_v25  ;;  %v390_v44 = vld [vmem:[%s576_s9] sm:$0xff] }
   0xa   :  { %127 = vmatpush.bf16.msra.mxu1 %v381_v6  ;;  %229 = vmatpush.bf16.msra.mxu3 %v388_v27  ;;  %v398_v45 = vld [vmem:[%s575_s8] ss:$0 sm:$0xff] }
   0xb   :  { %282 = vmatpush.bf16.msrb.mxu0 %v393_v35  ;;  %v399_v51 = vld [vmem:[%s577_s10] ss:$0 sm:$0xff] }
   0xe   :  { %128 = vmatpush.bf16.msra.mxu1 %v380_v7  ;;  %230 = vmatpush.bf16.msra.mxu3 %v387_v33 }
   0xf   :  { %283 = vmatpush.bf16.msrb.mxu0 %v392_v36 }
  0x12   :  { %231 = vmatpush.bf16.msra.mxu3 %v386_v34 }
  0x13   :  { %284 = vmatpush.bf16.msrb.mxu0 %v391_v37 }
  0x17   :  { %285 = vmatpush.bf16.msrb.mxu0 %v390_v44 }
  0x86   :  { %v75_v9 = vpop.f32.mrf.mxu0 }
  0x87   :  { %v76_v10 = vadd.f32 %v395_v8, %v75_v9 }
  0x89   :  { %v79_v11 = vmax.f32 %v76_v10, 0.0 }
  0x8b   :  { %v80_v12 = vpack.c.bf16 %v79_v11, %v79_v11 }
  0x8d   :  { %334 = vmatmul.msk.bf16.vlgmr.msra.gmra.mxu1 %vm117_vm1, %v80_v12 }
  0x8e   :  { %v77_v13 = vpop.f32.mrf.mxu0 }
 0x10a   :  { %v130_v15 = vpop.f32.mrf.mxu1 }
 0x10b   :  { %v131_v16 = vadd.f32 %v396_v14, %v130_v15 }
 0x10d   :  { %v134_v17 = vsel %vm62_vm0, %v131_v16, -inf }
 0x10e   :  { %135 = vmax.xlane.f32.xlu0 %v134_v17 }
 0x112   :  { %v132_v18 = vpop.f32.mrf.mxu1 }
 0x181   :  { %v136_v19 = vpop.xlane.xlu0 %135 }
 0x182   :  { %v137_v20 = vsub.f32 %v131_v16, %v136_v19 }
 0x184   :  { %v138_v21 = vmul.f32 1.442695, %v137_v20 }
 0x186   :  { %400 = vpow2.f32 %v138_v21 }
 0x18c   :  { %v401_v22 = vpop.eup %400 }
 0x18d   :  { %v140_v23 = vsel %vm62_vm0, %v401_v22, 0.0 }
 0x18e   :  { %141 = vadd.xlane.f32.xlu0 %v140_v23 }
 0x201   :  { %v142_v28 = vpop.xlane.xlu0 %141 }
 0x202   :  { %402 = vrcp.f32 %v142_v28 }
 0x208   :  { %v403_v29 = vpop.eup %402 }
 0x209   :  { %v144_v30 = vmul.f32 %v403_v29, %v401_v22 }
 0x20b   :  { %v145_v31 = vmul.f32 %v144_v30, %v40_v2 }
 0x20d   :  { %v151_v32 = vpack.c.bf16 %v145_v31, %v145_v31 }
 0x20f   :  { %343 = vmatmul.msk.bf16.vlgmr.msra.gmra.mxu2 %vm62_vm0, %v151_v32 }
 0x292   :  { %v179_v39 = vpop.f32.mrf.mxu2 }
 0x293   :  { %v180_v40 = vadd.f32 %v397_v38, %v179_v39 }
 0x295   :  { %v183_v41 = vmax.f32 %v180_v40, 0.0 }
 0x297   :  { %v193_v42 = vpack.c.bf16 %v183_v41, %v183_v41 }
 0x299   :  { %360 = vmatmul.msk.bf16.vlgmr.msra.gmra.mxu3 %vm117_vm1, %v193_v42 }
 0x29a   :  { %v181_v43 = vpop.f32.mrf.mxu2 }
 0x31c   :  { %v233_v46 = vpop.f32.mrf.mxu3 }
 0x31d   :  { %v234_v47 = vadd.f32 %v398_v45, %v233_v46 }
 0x31f   :  { %v237_v48 = vmax.f32 %v234_v47, 0.0 }
 0x321   :  { %v247_v49 = vpack.c.bf16 %v237_v48, %v237_v48 }
 0x323   :  { %377 = vmatmul.msk.bf16.vlgmr.msrb.gmra.mxu0 %vm117_vm1, %v247_v49 }
 0x324   :  { %v235_v50 = vpop.f32.mrf.mxu3 }
 0x3a0   :  { %v287_v52 = vpop.f32.mrf.mxu0 }
 0x3a1   :  { %v288_v53 = vadd.f32 %v399_v51, %v287_v52 }
 0x3a3   :  { %292 = vst.msk [vmem:[#allocation2] sm:$0xff] %vm291_vm2, %v288_v53 }
 0x3a4   :  { %303 = dma.vmem_to_hbm [thread:$0]  %s299_s2, 128, %s301_s4, [#allocation3]  }
 0x3a8   :  { %v289_v54 = vpop.f32.mrf.mxu0 }
 0x3a9   :  { %428 = dma.done.wait [#allocation3], 128  }
 0x3aa   :  { %429 = vsyncadd [#allocation3], 4294967168 }
 0x3ab   :  { %308 = vsyncpa [#allocation3], 1 }

</bundles_post_ra>
